<compile_context>
chip_gen: v7x
topology: tpu7x:2x2x1
jax: 0.10.0
libtpu: 0.0.40
codegen_flags: <defaults>
</compile_context>

<pallas_src>
import jax
import jax.numpy as jnp
from jax.experimental import pallas as pl
from jax.experimental.pallas import tpu as pltpu


def _round_up(x, m):
    return ((x + m - 1) // m) * m


def _vmem_capacity_bytes():
    # Per-core VMEM capacity; fall back to the smallest (v7x: 64 MiB) if the
    # query is unavailable so the derived limit is always safe.
    try:
        return int(pltpu.get_tpu_info().vmem_capacity_bytes)
    except Exception:
        return 64 * 1024 * 1024


def skipgram_kernel(emb_ref, w_ref, b_ref, out_ref):
    """One grid step computes logits for a TN-wide slice of the vocab.

    emb_ref : VMEM [B_pad, E]  (gathered embeddings; constant block index ->
                                fetched once, resident across all vocab tiles)
    w_ref   : VMEM [TN, E]     (linear weight tile, streamed per step)
    b_ref   : VMEM [1, TN] f32 (bias tile)
    out_ref : VMEM [B_pad, TN] f32 (logits tile)
    """
    # [B, E] x [TN, E] -> [B, TN], contracting over E (weight un-transposed),
    # f32 accumulation on the MXU regardless of streaming dtype.
    logits = jax.lax.dot_general(
        emb_ref[...],
        w_ref[...],
        dimension_numbers=(((1,), (1,)), ((), ())),
        preferred_element_type=jnp.float32,
    )
    out_ref[...] = (logits + b_ref[...]).astype(out_ref.dtype)


def vanilla_skipgram_forward(input_ids, emb_table, lin_w, lin_b, *,
                             tn=None, weight_dtype=jnp.bfloat16):
    """input_ids: [B] int, emb_table: [V, E] f32, lin_w: [V, E] f32, lin_b: [V] f32.

    Returns logits [B, V] f32, matching `emb_table[input_ids] @ lin_w.T + lin_b`.
    weight_dtype=jnp.float32 is bit-exact vs the PyTorch reference;
    jnp.bfloat16 (default) halves weight HBM traffic (the kernel's bottleneck).
    """
    B = input_ids.shape[0]
    V, E = emb_table.shape
    w_itemsize = jnp.dtype(weight_dtype).itemsize

    # Lane-dense vocab tile (multiple of 128). Cap so double-buffered weight
    # tiles stay under ~24 MiB (fits v7x's 64 MiB VMEM with room for the rest),
    # and never exceed 2048.
    if tn is None:
        w_tile_budget = 24 * 1024 * 1024
        tn_cap = max(128, ((w_tile_budget // (2 * E * w_itemsize)) // 128) * 128)
        tn = min(_round_up(V, 128), min(2048, tn_cap))
    tn = _round_up(tn, 128)

    V_pad = _round_up(V, tn)
    B_pad = _round_up(B, 8)

    # --- Embedding gather, hoisted out of the kernel (done once, not per tile).
    ids = input_ids.astype(jnp.int32)
    if B_pad != B:
        ids = jnp.concatenate([ids, jnp.zeros((B_pad - B,), jnp.int32)])
    emb = jnp.take(emb_table, ids, axis=0).astype(weight_dtype)   # [B_pad, E]

    # --- Weight / bias padding and streaming dtype.
    w = lin_w.astype(weight_dtype)
    bias = lin_b.astype(jnp.float32)          # bias bytes are negligible; keep f32
    if V_pad != V:
        w = jnp.pad(w, ((0, V_pad - V), (0, 0)))
        bias = jnp.pad(bias, (0, V_pad - V))
    bias2d = bias.reshape(1, V_pad)

    grid = (V_pad // tn,)

    grid_spec = pltpu.PrefetchScalarGridSpec(
        num_scalar_prefetch=0,
        grid=grid,
        in_specs=[
            # Constant block index -> fetched once, stays resident in VMEM.
            pl.BlockSpec((B_pad, E), lambda j: (0, 0)),
            pl.BlockSpec((tn, E), lambda j: (j, 0)),     # weight tile [TN, E]
            pl.BlockSpec((1, tn), lambda j: (0, j)),      # bias tile   [1, TN]
        ],
        out_specs=pl.BlockSpec((B_pad, tn), lambda j: (0, j)),
    )

    # VMEM footprint: double-buffered weight + bias + output tiles, resident
    # activation (counted x2 to be safe), plus headroom. Cap at 3/4 of the
    # per-core capacity so a v6e-tuned limit never overshoots v7x's 64 MiB.
    footprint = (
        2 * tn * E * w_itemsize          # weight tiles (double-buffered)
        + 2 * tn * 4                     # bias tiles
        + 2 * B_pad * tn * 4             # output tiles
        + 2 * B_pad * E * w_itemsize     # activation
    )
    vmem_limit = min(
        max(2 * footprint + (8 * 1024 * 1024), 32 * 1024 * 1024),
        (3 * _vmem_capacity_bytes()) // 4,
    )

    cost = pl.CostEstimate(
        flops=2 * B_pad * E * V_pad,
        transcendentals=0,
        bytes_accessed=(B_pad * E * w_itemsize          # activation (once)
                        + V_pad * E * w_itemsize        # weights (once)
                        + V_pad * 4                     # bias
                        + B_pad * V_pad * 4),           # output
    )

    out = pl.pallas_call(
        skipgram_kernel,
        out_shape=jax.ShapeDtypeStruct((B_pad, V_pad), jnp.float32),
        grid_spec=grid_spec,
        compiler_params=pltpu.CompilerParams(
            dimension_semantics=("parallel",),   # vocab tiles across TCs (v7x)
            vmem_limit_bytes=int(vmem_limit),
        ),
        cost_estimate=cost,
    )(emb, w, bias2d)

    return out[:B, :V]


if __name__ == "__main__":
    vocab_size = 32
    embedding_dim = 16
    batch = 8

    key = jax.random.PRNGKey(0)
    k_emb, k_w, k_b, k_ids = jax.random.split(key, 4)

    # Deterministic parameter init (shapes match nn.Embedding / nn.Linear).
    emb_table = jax.random.normal(
        k_emb, (vocab_size, embedding_dim), dtype=jnp.float32)       # N(0,1)
    bound = 1.0 / jnp.sqrt(embedding_dim)
    lin_w = jax.random.uniform(
        k_w, (vocab_size, embedding_dim),
        minval=-bound, maxval=bound, dtype=jnp.float32)              # [V, E]
    lin_b = jax.random.uniform(
        k_b, (vocab_size,),
        minval=-bound, maxval=bound, dtype=jnp.float32)              # [V]

    input_ids = jax.random.randint(
        k_ids, (batch,), 0, vocab_size, dtype=jnp.int32)

    # Pure-JAX reference of the PyTorch forward semantics (f32).
    ref = emb_table[input_ids] @ lin_w.T + lin_b

    # f32 weight streaming: bit-exact vs the PyTorch reference.
    out_f32 = vanilla_skipgram_forward(
        input_ids, emb_table, lin_w, lin_b, weight_dtype=jnp.float32)
    out_f32 = jax.block_until_ready(out_f32)
    assert out_f32.shape == (batch, vocab_size), out_f32.shape
    assert jnp.allclose(out_f32, ref, atol=1e-5, rtol=1e-5), "f32 mismatch"

    # bf16 weight streaming (default, HBM-roofline path): loose tolerance.
    out_bf16 = vanilla_skipgram_forward(
        input_ids, emb_table, lin_w, lin_b, weight_dtype=jnp.bfloat16)
    out_bf16 = jax.block_until_ready(out_bf16)
    assert out_bf16.shape == (batch, vocab_size), out_bf16.shape
    assert jnp.allclose(out_bf16, ref, atol=2e-2, rtol=2e-2), "bf16 mismatch"

    print("KERNEL_OK")
</pallas_src>

<mosaic_0001>
module attributes {stable_mosaic.version = 11 : i64} {
  func.func @skipgram_kernel(%arg0: i32, %arg1: memref<8x16xf32, #tpu.memory_space<vmem>>, %arg2: memref<128x16xf32, #tpu.memory_space<vmem>>, %arg3: memref<1x128xf32, #tpu.memory_space<vmem>>, %arg4: memref<8x128xf32, #tpu.memory_space<vmem>>) attributes {dimension_semantics = [#tpu.dimension_semantics<parallel>], iteration_bounds = array<i64: 1>, scalar_prefetch = 0 : i64, scratch_operands = 0 : i64, tpu.core_type = #tpu.core_type<tc>, window_params = [{pipeline_mode = #tpu.pipeline_mode<synchronous>, transform_indices = @transform_0, window_bounds = array<i64: 8, 16>}, {transform_indices = @transform_1, window_bounds = array<i64: 128, 16>}, {transform_indices = @transform_2, window_bounds = array<i64: 1, 128>}, {transform_indices = @transform_3, window_bounds = array<i64: 8, 128>}]} {
    %c0 = arith.constant 0 : index
    %c0_0 = arith.constant 0 : index
    %0 = vector.load %arg1[%c0, %c0_0] : memref<8x16xf32, #tpu.memory_space<vmem>>, vector<8x16xf32>
    %c0_1 = arith.constant 0 : index
    %c0_2 = arith.constant 0 : index
    %1 = vector.load %arg2[%c0_1, %c0_2] : memref<128x16xf32, #tpu.memory_space<vmem>>, vector<128x16xf32>
    %cst = arith.constant dense<0.000000e+00> : vector<8x128xf32>
    %2 = tpu.matmul %0, %1, %cst {dimension_numbers = #tpu.dot_dimension_numbers<[1], [1], [0], [0], [0, 0, 1, 0], [], []>} : vector<8x16xf32>, vector<128x16xf32>, vector<8x128xf32> -> vector<8x128xf32>
    %c0_3 = arith.constant 0 : index
    %c0_4 = arith.constant 0 : index
    %3 = vector.load %arg3[%c0_3, %c0_4] : memref<1x128xf32, #tpu.memory_space<vmem>>, vector<1x128xf32>
    %4 = vector.broadcast %3 : vector<1x128xf32> to vector<8x128xf32>
    %5 = arith.addf %2, %4 : vector<8x128xf32>
    %c0_5 = arith.constant 0 : index
    %c0_6 = arith.constant 0 : index
    %6 = vector.load %arg4[%c0_5, %c0_6] : memref<8x128xf32, #tpu.memory_space<vmem>>, vector<8x128xf32>
    tpu.vector_store %arg4[%c0_5, %c0_6], %5 {strides = array<i32>} : memref<8x128xf32, #tpu.memory_space<vmem>>, vector<8x128xf32>,
    return
  }
  func.func @transform_0(%arg0: i32) -> (i32, i32) {
    %c0_i32 = arith.constant 0 : i32
    %c0_i32_0 = arith.constant 0 : i32
    %c0_i32_1 = arith.constant 0 : i32
    return %c0_i32, %c0_i32_0 : i32, i32
  }
  func.func @transform_1(%arg0: i32) -> (i32, i32) {
    %c0_i32 = arith.constant 0 : i32
    %c0_i32_0 = arith.constant 0 : i32
    return %arg0, %c0_i32 : i32, i32
  }
  func.func @transform_2(%arg0: i32) -> (i32, i32) {
    %c0_i32 = arith.constant 0 : i32
    %c0_i32_0 = arith.constant 0 : i32
    return %c0_i32, %arg0 : i32, i32
  }
  func.func @transform_3(%arg0: i32) -> (i32, i32) {
    %c0_i32 = arith.constant 0 : i32
    %c0_i32_0 = arith.constant 0 : i32
    return %c0_i32, %arg0 : i32, i32
  }
}

</mosaic_0001>

<bundles_post_ra>
// kernel: tpu_custom_call.1
= control target key start
LH: loop header
LB: loop body
LE: loop exit
PB: predicated region body
PF: predicated region fallthrough
CT: control target
= control target key end

     0   :  { %vm39_vm0 = vcmask 130048   ;;  %v306_v2 = vmov 0.0|0.0   ;;  %vm307_vm2 = vmmov 0   ;;  %v308_v5 = vmov 0.0   ;;  %s419_s0 = inlined_call_operand.vmem [shape: f32[8,16], index: 0, kind: input, shape index: {}]   ;;  %s420_s1 = inlined_call_operand.vmem [shape: f32[128,16], index: 1, kind: input, shape index: {}]   ;;  %s421_s2 = inlined_call_operand.vmem [shape: f32[1,128], index: 2, kind: input, shape index: {}]   ;;  %s422_s3 = inlined_call_operand.hbm [shape: f32[8,128], index: 3, kind: output, shape index: {}]  }
   0x1   :  { %v16_v0 = vld [vmem:[%s420_s1] sm:$0xff]  ;;  %v17_v1 = vld [vmem:[%s420_s1 + $0x8] sm:$0xff]  ;;  %246 = vmatprep.subr.bf16.mxu0 %v306_v2  ;;  %vm338_vm1 = vmpackc.low %vm39_vm0, %vm39_vm0  ;;  %243 = vmatprep.mubr.msk.f32.mxu0 %vm307_vm2, %v308_v5 }
   0x2   :  { %v247_v3 = vpack.c.bf16 %v17_v1, %v16_v0  ;;  %v18_v6 = vld [vmem:[%s420_s1 + $0x10] sm:$0xff]  ;;  %v19_v7 = vld [vmem:[%s420_s1 + $0x18] sm:$0xff] }
   0x4   :  { %249 = vmatpush3.bf16.xpose.msk.msra.mxu0 %vm338_vm1, %v247_v3 }
   0x5   :  { %250 = vmatprep.subr.bf16.mxu0 %v306_v2 }
   0x6   :  { %8 = vsyncpa [#allocation3], 0  ;;  %v251_v8 = vpack.c.bf16 %v19_v7, %v18_v6  ;;  %v20_v9 = vld [vmem:[%s420_s1 + $0x20] sm:$0xff]  ;;  %v21_v10 = vld [vmem:[%s420_s1 + $0x28] sm:$0xff]  ;;  %s309_s21 = smov [#allocation2]  }
   0x7   :  { %v255_v11 = vpack.c.bf16 %v21_v10, %v20_v9  ;;  %v22_v12 = vld [vmem:[%s420_s1 + $0x30] sm:$0xff]  ;;  %v23_v13 = vld [vmem:[%s420_s1 + $0x38] sm:$0xff]  ;;  %v24_v15 = vld [vmem:[%s420_s1 + $0x40] sm:$0xff]  ;;  %s168_s22 = sshll.u32 %s309_s21, 4  ;;  %s169_s22 = int_to_ptr.vmem [resolvable:$true] %s168_s22 }
   0x8   :  { %v259_v14 = vpack.c.bf16 %v23_v13, %v22_v12  ;;  %v25_v16 = vld [vmem:[%s420_s1 + $0x48] sm:$0xff]  ;;  %v26_v18 = vld [vmem:[%s420_s1 + $0x50] sm:$0xff]  ;;  %v27_v19 = vld [vmem:[%s420_s1 + $0x58] sm:$0xff]  ;;  %p287_p1 = scmp.lt.s32.totalorder %s169_s22, %s169_s22 }
   0x9   :  { %v263_v17 = vpack.c.bf16 %v25_v16, %v24_v15  ;;  %v267_v20 = vpack.c.bf16 %v27_v19, %v26_v18  ;;  %v28_v21 = vld [vmem:[%s420_s1 + $0x60] sm:$0xff]  ;;  %v29_v22 = vld [vmem:[%s420_s1 + $0x68] sm:$0xff]  ;;  %v30_v24 = vld [vmem:[%s420_s1 + $0x70] sm:$0xff] }
   0xa   :  { %v271_v23 = vpack.c.bf16 %v29_v22, %v28_v21  ;;  %v31_v25 = vld [vmem:[%s420_s1 + $0x78] sm:$0xff]  ;;  %v15_v27 = vld [vmem:[%s419_s0] sm:$0xff]  ;;  %s282_s1 = scalar_lea.vmem %s169_s22, 128 }
   0xb   :  { %v275_v26 = vpack.c.bf16 %v31_v25, %v30_v24  ;;  %v176_v28 = vld [vmem:[%s421_s2] ss:$0 sm:$0xff]  ;;  %p283_p0 = scmp.ne.s32.totalorder %s169_s22, %s282_s1  ;;  %p288_p2 = scmp.lt.s32.totalorder %s282_s1, %s282_s1 }
   0xc   :  { %253 = vmatpush3.bf16.xpose.msk.msra.mxu0 %vm338_vm1, %v251_v8 }
   0xd   :  { %254 = vmatprep.subr.bf16.mxu0 %v306_v2  ;;  %p289_p3 = por %p288_p2, %p287_p1 }
   0xf   :  { %p290_p4 = pnand %p289_p3, %p283_p0 }
  0x14   :  { %257 = vmatpush3.bf16.xpose.msk.msra.mxu0 %vm338_vm1, %v255_v11 }
  0x15   :  { %258 = vmatprep.subr.bf16.mxu0 %v306_v2 }
  0x1c   :  { %261 = vmatpush3.bf16.xpose.msk.msra.mxu0 %vm338_vm1, %v259_v14 }
  0x1d   :  { %262 = vmatprep.subr.bf16.mxu0 %v306_v2 }
  0x24   :  { %265 = vmatpush3.bf16.xpose.msk.msra.mxu0 %vm338_vm1, %v263_v17 }
  0x25   :  { %266 = vmatprep.subr.bf16.mxu0 %v306_v2 }
  0x2c   :  { %269 = vmatpush3.bf16.xpose.msk.msra.mxu0 %vm338_vm1, %v267_v20 }
  0x2d   :  { %270 = vmatprep.subr.bf16.mxu0 %v306_v2 }
  0x34   :  { %273 = vmatpush3.bf16.xpose.msk.msra.mxu0 %vm338_vm1, %v271_v23 }
  0x35   :  { %274 = vmatprep.subr.bf16.mxu0 %v306_v2 }
  0x3c   :  { %277 = vmatpush3.bf16.xpose.msk.msra.mxu0 %vm338_vm1, %v275_v26 }
  0x43   :  { %244 = vmatmul.mubr.msk.f32.vlgmr.msra.gmra.mrb[0].mxu0 %vm39_vm0, %v15_v27 }
 0x116   :  { %v157_v29 = vpop.f32.mrb[0].mxu0 }
 0x117   :  { %v158_v30 = vadd.f32 %v176_v28, %v157_v29  ;;  %v245_v31 = vpop.f32.mrb[1].mxu0 }
 0x119   :  { %161 = vst [vmem:[#allocation2] sm:$0xff] %v158_v30 }
 0x11a   :  { %293 = shalt.err (!%p290_p4)
}
 0x11b   :  { %s294_s24 = scalar_lea.hbm %s422_s3, 128 }
 0x11c   :  { %p295_p5 = scmp.ne.s32.totalorder %s422_s3, %s294_s24  ;;  %p298_p6 = scmp.lt.u32.totalorder %s294_s24, %s422_s3 }
 0x11e   :  { %p300_p7 = pnand %p298_p6, %p295_p5 }
 0x120   :  { %303 = shalt.err (!%p300_p7)
}
 0x121   :  { %171 = dma.vmem_to_hbm [thread:$0]  %s169_s22, 128, %s422_s3, [#allocation3]  }
 0x122   :  { %304 = dma.done.wait [#allocation3], 128  }
 0x123   :  { %305 = vsyncadd [#allocation3], 4294967168 }
 0x124   :  { %175 = vsyncpa [#allocation3], 1 }

</bundles_post_ra>
